<compile_context>
chip_gen: v6e
topology: v6e:2x2x1
jax: 0.10.0
libtpu: 0.0.40
codegen_flags: <defaults>
</compile_context>

<pallas_src>
import functools

import jax
import jax.numpy as jnp
from jax import lax
from jax.experimental import pallas as pl
from jax.experimental.pallas import tpu as pltpu


def _round_up(x, m):
    return ((x + m - 1) // m) * m


def sentiment_rnn_kernel(u_ref, whh_ref, wfc_ref, bfc_ref, out_ref, h_ref,
                         *, seq_len, t_tile, unroll):
    """One (batch block, time slab) step of the RNN recurrence.

    u_ref   : (t_tile, b_tile, Hp)  pre-projected inputs  x_t @ W_ih^T + (b_ih + b_hh)
    whh_ref : (Hp, Hp)              W_hh^T (zero padded, resident)
    wfc_ref : (1, Hp)               fc weight row (zero padded, resident)
    bfc_ref : (1, 1)                fc bias
    out_ref : (b_tile, 1)           logits, written on the last time slab only
    h_ref   : (b_tile, Hp)          f32 hidden-state carry (persistent VMEM scratch)
    """
    t_blk = pl.program_id(1)
    n_t = pl.num_programs(1)

    @pl.when(t_blk == 0)
    def _init():
        h_ref[...] = jnp.zeros_like(h_ref)

    whh = whh_ref[...]                      # loaded once per slab
    base = t_blk * t_tile                   # first global timestep of this slab
    ragged = (seq_len % t_tile) != 0        # static: does the last slab need masking?

    def step(t, h):
        # Pre-projected input for this timestep, loaded per-step from the streamed slab
        # (keeps vreg live ranges bounded instead of one huge slab-wide SSA value).
        u_t = u_ref[t].astype(jnp.float32)
        z = u_t + jnp.dot(h.astype(whh.dtype), whh,
                          preferred_element_type=jnp.float32)
        h_new = jnp.tanh(z)                 # EUP; kept in f32
        if ragged:
            # Padded timesteps past seq_len must NOT update h (tanh(b + h@Whh) != h).
            h_new = jnp.where(base + t < seq_len, h_new, h)
        return h_new

    h = lax.fori_loop(0, t_tile, step, h_ref[...], unroll=unroll)
    h_ref[...] = h

    @pl.when(t_blk == n_t - 1)
    def _finalize():
        # Final FC as VPU multiply + lane-reduce (avoids a degenerate (H,1) MXU pass).
        out_ref[...] = (jnp.sum(h * wfc_ref[...], axis=-1, keepdims=True)
                        + bfc_ref[...])


def sentiment_rnn_forward(token_ids, params, *, t_tile=None, b_tile=None,
                          compute_dtype=jnp.float32):
    """Table fusion + padding/layout plumbing, then one streamed pallas_call."""
    emb = params["embedding"]          # (V, E), row 0 zero (padding_idx=0)
    w_ih = params["w_ih"]              # (H, E)
    w_hh = params["w_hh"]              # (H, H)
    b_ih = params["b_ih"]              # (H,)
    b_hh = params["b_hh"]              # (H,)
    w_fc = params["w_fc"]              # (1, H)
    b_fc = params["b_fc"]              # (1,)

    B, T = token_ids.shape
    H = w_hh.shape[0]
    csize = jnp.dtype(compute_dtype).itemsize

    # vreg/MXU-aligned padded sizes (f32 sublanes / 128 lanes).
    Bp = _round_up(B, 8)
    Hp = _round_up(H, 128)

    # Batch tiling: leading "parallel" grid axis (set b_tile = Bp // 2 on v7x to use both TCs).
    if b_tile is None or b_tile % 8 != 0 or Bp % b_tile != 0:
        b_tile = Bp
    n_b = Bp // b_tile

    # Time-slab size: biggest slab whose double-buffered stream fits a conservative budget
    # (sized against v7x's 64 MiB per-TC VMEM; v5e/v6e have more headroom).
    if t_tile is None:
        slab_budget = 16 << 20
        t_tile = max(1, slab_budget // (2 * b_tile * Hp * csize))
    t_tile = max(1, min(int(t_tile), T))
    n_t = pl.cdiv(T, t_tile)
    Tp = n_t * t_tile

    # ---- Algebraic fusion: Embedding . W_ih^T (+ both biases) folded into one table.
    #      P[v] = emb[v] @ W_ih^T + (b_ih + b_hh); gathering rows of P == projecting x_t.
    proj = emb @ w_ih.T + (b_ih + b_hh)[None, :]                        # (V, H), f32, once
    proj = jnp.pad(proj, ((0, 0), (0, Hp - H))).astype(compute_dtype)   # (V, Hp)

    # ---- Pad token ids (cheap) instead of activations; gather directly time-major.
    #      Batch pad rows use token 0; ragged time pad uses token 0 and is masked in-kernel.
    tok = jnp.pad(token_ids, ((0, Bp - B), (0, Tp - T)))                # (Bp, Tp)
    u = jnp.take(proj, tok.T, axis=0)                                   # (Tp, Bp, Hp)

    whh_t = jnp.pad(w_hh.T, ((0, Hp - H), (0, Hp - H))).astype(compute_dtype)   # (Hp, Hp)
    wfc_r = jnp.pad(w_fc.reshape(1, H), ((0, 0), (0, Hp - H))).astype(jnp.float32)
    bfc = b_fc.reshape(1, 1).astype(jnp.float32)

    # Explicit scoped-VMEM sizing (v5e default is only 16 MiB; v7x physical is 64 MiB per TC).
    footprint = (2 * t_tile * b_tile * Hp * csize      # streamed u slab (double-buffered)
                 + 2 * (Hp * Hp) * csize               # W_hh^T (worst case double-buffered)
                 + 2 * (Hp + 1) * 4                    # fc row + bias
                 + b_tile * Hp * 4                     # hidden-state scratch
                 + 2 * b_tile * 4)                     # output block
    vmem_limit = int(min(max(2 * footprint, 32 << 20), 64 << 20))

    kernel = functools.partial(
        sentiment_rnn_kernel, seq_len=T, t_tile=t_tile,
        unroll=(True if t_tile <= 8 else 8))           # bounded unroll for large slabs

    def build(single_buffer_weights):
        # Constant-index (resident) operands do not need double buffering.
        res = dict(pipeline_mode=pl.Buffered(1)) if single_buffer_weights else {}
        grid_spec = pltpu.PrefetchScalarGridSpec(
            num_scalar_prefetch=0,
            grid=(n_b, n_t),
            in_specs=[
                pl.BlockSpec((t_tile, b_tile, Hp), lambda b, t: (t, b, 0)),   # streamed slab
                pl.BlockSpec((Hp, Hp), lambda b, t: (0, 0), **res),           # W_hh^T
                pl.BlockSpec((1, Hp), lambda b, t: (0, 0), **res),            # fc row
                pl.BlockSpec((1, 1), lambda b, t: (0, 0), **res),             # fc bias
            ],
            out_specs=pl.BlockSpec((b_tile, 1), lambda b, t: (b, 0)),
            scratch_shapes=[pltpu.VMEM((b_tile, Hp), jnp.float32)],           # h carry
        )
        return pl.pallas_call(
            kernel,
            out_shape=jax.ShapeDtypeStruct((Bp, 1), jnp.float32),
            grid_spec=grid_spec,
            compiler_params=pltpu.CompilerParams(
                dimension_semantics=("parallel", "arbitrary"),   # batch parallel, time serial
                vmem_limit_bytes=vmem_limit),
        )

    try:
        out = jax.block_until_ready(build(True)(u, whh_t, wfc_r, bfc))
    except Exception:
        # Some builds may reject pipeline_mode on top-level pallas_call BlockSpecs;
        # fall back to default (double-buffered) resident operands.
        out = jax.block_until_ready(build(False)(u, whh_t, wfc_r, bfc))

    return out[:B, :]


def init_params(vocab_size, embed_dim, hidden_dim, key):
    """Deterministic synthetic parameters (shapes follow nn.Embedding / nn.RNN / nn.Linear)."""
    k = jax.random.split(key, 7)
    scale = 0.1
    emb = scale * jax.random.normal(k[0], (vocab_size, embed_dim), jnp.float32)
    emb = emb.at[0].set(0.0)  # padding_idx=0 -> zero row
    return {
        "embedding": emb,
        "w_ih": scale * jax.random.normal(k[1], (hidden_dim, embed_dim), jnp.float32),
        "w_hh": scale * jax.random.normal(k[2], (hidden_dim, hidden_dim), jnp.float32),
        "b_ih": scale * jax.random.normal(k[3], (hidden_dim,), jnp.float32),
        "b_hh": scale * jax.random.normal(k[4], (hidden_dim,), jnp.float32),
        "w_fc": scale * jax.random.normal(k[5], (1, hidden_dim), jnp.float32),
        "b_fc": scale * jax.random.normal(k[6], (1,), jnp.float32),
    }


def reference_forward(token_ids, params):
    """Pure-JAX reference mirroring the PyTorch forward."""
    x = jnp.take(params["embedding"], token_ids, axis=0)  # (B, T, E)
    B, T, _ = x.shape
    H = params["w_hh"].shape[0]
    h = jnp.zeros((B, H), jnp.float32)
    for t in range(T):
        h = jnp.tanh(
            x[:, t, :] @ params["w_ih"].T
            + params["b_ih"]
            + h @ params["w_hh"].T
            + params["b_hh"]
        )
    return h @ params["w_fc"].T + params["b_fc"]


if __name__ == "__main__":
    vocab_size, embed_dim, hidden_dim, output_dim = 50, 16, 32, 1
    batch, seq = 2, 8

    key = jax.random.PRNGKey(0)
    k_tok, k_params = jax.random.split(key)

    token_ids = jax.random.randint(k_tok, (batch, seq), 0, vocab_size, dtype=jnp.int32)
    params = init_params(vocab_size, embed_dim, hidden_dim, k_params)

    # t_tile=3 deliberately does NOT divide seq=8: exercises the cdiv time grid and the masked
    # ragged last slab (3 grid steps of 3/3/2 valid timesteps). compute_dtype=f32 so the 1e-5
    # check against the f32 reference holds (use bf16 at production shapes).
    out = sentiment_rnn_forward(token_ids, params, t_tile=3, compute_dtype=jnp.float32)
    out = jax.block_until_ready(out)

    ref = reference_forward(token_ids, params)
    assert out.shape == (batch, output_dim), out.shape
    assert jnp.allclose(out, ref, atol=1e-5, rtol=1e-5), (out, ref)

    print("KERNEL_OK")
</pallas_src>

<mosaic_0001>
module attributes {stable_mosaic.version = 11 : i64} {
  func.func @sentiment_rnn_kernel(%arg0: i32, %arg1: i32, %arg2: memref<3x8x128xf32, #tpu.memory_space<vmem>>, %arg3: memref<128x128xf32, #tpu.memory_space<vmem>>, %arg4: memref<1x128xf32, #tpu.memory_space<vmem>>, %arg5: memref<1x1xf32, #tpu.memory_space<vmem>>, %arg6: memref<8x1xf32, #tpu.memory_space<vmem>>, %arg7: memref<8x128xf32, #tpu.memory_space<vmem>>) attributes {dimension_semantics = [#tpu.dimension_semantics<parallel>, #tpu.dimension_semantics<arbitrary>], iteration_bounds = array<i64: 1, 3>, scalar_prefetch = 0 : i64, scratch_operands = 1 : i64, tpu.core_type = #tpu.core_type<tc>, window_params = [{transform_indices = @transform_0, window_bounds = array<i64: 3, 8, 128>}, {pipeline_mode = #tpu.pipeline_mode<synchronous>, transform_indices = @transform_1, window_bounds = array<i64: 128, 128>}, {pipeline_mode = #tpu.pipeline_mode<synchronous>, transform_indices = @transform_2, window_bounds = array<i64: 1, 128>}, {pipeline_mode = #tpu.pipeline_mode<synchronous>, transform_indices = @transform_3, window_bounds = array<i64: 1, 1>}, {transform_indices = @transform_4, window_bounds = array<i64: 8, 1>}]} {
    %c0_i32 = arith.constant 0 : i32
    %0 = arith.cmpi eq, %arg1, %c0_i32 : i32
    %1 = arith.extui %0 : i1 to i32
    %c0_i32_0 = arith.constant 0 : i32
    %2 = arith.cmpi ne, %1, %c0_i32_0 : i32
    scf.if %2 {
      %cst_20 = arith.constant 0.000000e+00 : f32
      %37 = vector.broadcast %cst_20 : f32 to vector<8x128xf32>
      %c0_21 = arith.constant 0 : index
      %c0_22 = arith.constant 0 : index
      %38 = vector.load %arg7[%c0_21, %c0_22] : memref<8x128xf32, #tpu.memory_space<vmem>>, vector<8x128xf32>
      tpu.vector_store %arg7[%c0_21, %c0_22], %37 {strides = array<i32>} : memref<8x128xf32, #tpu.memory_space<vmem>>, vector<8x128xf32>,
    } else {
    }
    %c0 = arith.constant 0 : index
    %c0_1 = arith.constant 0 : index
    %3 = vector.load %arg3[%c0, %c0_1] : memref<128x128xf32, #tpu.memory_space<vmem>>, vector<128x128xf32>
    %c3_i32 = arith.constant 3 : i32
    %4 = arith.muli %arg1, %c3_i32 : i32
    %c0_2 = arith.constant 0 : index
    %c0_3 = arith.constant 0 : index
    %5 = vector.load %arg7[%c0_2, %c0_3] : memref<8x128xf32, #tpu.memory_space<vmem>>, vector<8x128xf32>
    %c0_i32_4 = arith.constant 0 : i32
    %6 = arith.index_cast %c0_i32_4 : i32 to index
    %c0_5 = arith.constant 0 : index
    %c0_6 = arith.constant 0 : index
    %7 = vector.load %arg2[%6, %c0_5, %c0_6] : memref<3x8x128xf32, #tpu.memory_space<vmem>>, vector<1x8x128xf32>
    %8 = vector.shape_cast %7 : vector<1x8x128xf32> to vector<8x128xf32>
    %cst = arith.constant dense<0.000000e+00> : vector<8x128xf32>
    %9 = tpu.matmul %5, %3, %cst {dimension_numbers = #tpu.dot_dimension_numbers<[1], [0], [0], [1], [0, 0, 1, 1], [], []>} : vector<8x128xf32>, vector<128x128xf32>, vector<8x128xf32> -> vector<8x128xf32>
    %10 = arith.addf %8, %9 : vector<8x128xf32>
    %11 = math.tanh %10 : vector<8x128xf32>
    %12 = arith.addi %4, %c0_i32_4 : i32
    %c8_i32 = arith.constant 8 : i32
    %13 = arith.cmpi slt, %12, %c8_i32 : i32
    %14 = arith.select %13, %11, %5 : vector<8x128xf32>
    %c1_i32 = arith.constant 1 : i32
    %15 = arith.index_cast %c1_i32 : i32 to index
    %c0_7 = arith.constant 0 : index
    %c0_8 = arith.constant 0 : index
    %16 = vector.load %arg2[%15, %c0_7, %c0_8] : memref<3x8x128xf32, #tpu.memory_space<vmem>>, vector<1x8x128xf32>
    %17 = vector.shape_cast %16 : vector<1x8x128xf32> to vector<8x128xf32>
    %cst_9 = arith.constant dense<0.000000e+00> : vector<8x128xf32>
    %18 = tpu.matmul %14, %3, %cst_9 {dimension_numbers = #tpu.dot_dimension_numbers<[1], [0], [0], [1], [0, 0, 1, 1], [], []>} : vector<8x128xf32>, vector<128x128xf32>, vector<8x128xf32> -> vector<8x128xf32>
    %19 = arith.addf %17, %18 : vector<8x128xf32>
    %20 = math.tanh %19 : vector<8x128xf32>
    %21 = arith.addi %4, %c1_i32 : i32
    %c8_i32_10 = arith.constant 8 : i32
    %22 = arith.cmpi slt, %21, %c8_i32_10 : i32
    %23 = arith.select %22, %20, %14 : vector<8x128xf32>
    %c2_i32 = arith.constant 2 : i32
    %24 = arith.index_cast %c2_i32 : i32 to index
    %c0_11 = arith.constant 0 : index
    %c0_12 = arith.constant 0 : index
    %25 = vector.load %arg2[%24, %c0_11, %c0_12] : memref<3x8x128xf32, #tpu.memory_space<vmem>>, vector<1x8x128xf32>
    %26 = vector.shape_cast %25 : vector<1x8x128xf32> to vector<8x128xf32>
    %cst_13 = arith.constant dense<0.000000e+00> : vector<8x128xf32>
    %27 = tpu.matmul %23, %3, %cst_13 {dimension_numbers = #tpu.dot_dimension_numbers<[1], [0], [0], [1], [0, 0, 1, 1], [], []>} : vector<8x128xf32>, vector<128x128xf32>, vector<8x128xf32> -> vector<8x128xf32>
    %28 = arith.addf %26, %27 : vector<8x128xf32>
    %29 = math.tanh %28 : vector<8x128xf32>
    %30 = arith.addi %4, %c2_i32 : i32
    %c8_i32_14 = arith.constant 8 : i32
    %31 = arith.cmpi slt, %30, %c8_i32_14 : i32
    %32 = arith.select %31, %29, %23 : vector<8x128xf32>
    %c3_i32_15 = arith.constant 3 : i32
    %c0_16 = arith.constant 0 : index
    %c0_17 = arith.constant 0 : index
    %33 = vector.load %arg7[%c0_16, %c0_17] : memref<8x128xf32, #tpu.memory_space<vmem>>, vector<8x128xf32>
    tpu.vector_store %arg7[%c0_16, %c0_17], %32 {strides = array<i32>} : memref<8x128xf32, #tpu.memory_space<vmem>>, vector<8x128xf32>,
    %c2_i32_18 = arith.constant 2 : i32
    %34 = arith.cmpi eq, %arg1, %c2_i32_18 : i32
    %35 = arith.extui %34 : i1 to i32
    %c0_i32_19 = arith.constant 0 : i32
    %36 = arith.cmpi ne, %35, %c0_i32_19 : i32
    scf.if %36 {
      %c0_20 = arith.constant 0 : index
      %c0_21 = arith.constant 0 : index
      %37 = vector.load %arg4[%c0_20, %c0_21] : memref<1x128xf32, #tpu.memory_space<vmem>>, vector<1x128xf32>
      %38 = vector.broadcast %37 : vector<1x128xf32> to vector<8x128xf32>
      %39 = arith.mulf %32, %38 : vector<8x128xf32>
      %cst_22 = arith.constant dense<0.000000e+00> : vector<8xf32>
      %40 = vector.multi_reduction <add>, %39, %cst_22 [1] : vector<8x128xf32> to vector<8xf32>
      %41 = vector.shape_cast %40 : vector<8xf32> to vector<8x1xf32>
      %c0_23 = arith.constant 0 : index
      %c0_24 = arith.constant 0 : index
      %42 = vector.load %arg5[%c0_23, %c0_24] : memref<1x1xf32, #tpu.memory_space<vmem>>, vector<1x1xf32>
      %43 = vector.broadcast %42 : vector<1x1xf32> to vector<8x1xf32>
      %44 = arith.addf %41, %43 : vector<8x1xf32>
      %c0_25 = arith.constant 0 : index
      %c0_26 = arith.constant 0 : index
      %45 = vector.load %arg6[%c0_25, %c0_26] : memref<8x1xf32, #tpu.memory_space<vmem>>, vector<8x1xf32>
      tpu.vector_store %arg6[%c0_25, %c0_26], %44 {strides = array<i32>} : memref<8x1xf32, #tpu.memory_space<vmem>>, vector<8x1xf32>,
    } else {
    }
    return
  }
  func.func @transform_0(%arg0: i32, %arg1: i32) -> (i32, i32, i32) {
    %c0_i32 = arith.constant 0 : i32
    %c0_i32_0 = arith.constant 0 : i32
    return %arg1, %arg0, %c0_i32 : i32, i32, i32
  }
  func.func @transform_1(%arg0: i32, %arg1: i32) -> (i32, i32) {
    %c0_i32 = arith.constant 0 : i32
    %c0_i32_0 = arith.constant 0 : i32
    %c0_i32_1 = arith.constant 0 : i32
    return %c0_i32, %c0_i32_0 : i32, i32
  }
  func.func @transform_2(%arg0: i32, %arg1: i32) -> (i32, i32) {
    %c0_i32 = arith.constant 0 : i32
    %c0_i32_0 = arith.constant 0 : i32
    %c0_i32_1 = arith.constant 0 : i32
    return %c0_i32, %c0_i32_0 : i32, i32
  }
  func.func @transform_3(%arg0: i32, %arg1: i32) -> (i32, i32) {
    %c0_i32 = arith.constant 0 : i32
    %c0_i32_0 = arith.constant 0 : i32
    %c0_i32_1 = arith.constant 0 : i32
    return %c0_i32, %c0_i32_0 : i32, i32
  }
  func.func @transform_4(%arg0: i32, %arg1: i32) -> (i32, i32) {
    %c0_i32 = arith.constant 0 : i32
    %c0_i32_0 = arith.constant 0 : i32
    return %arg0, %c0_i32 : i32, i32
  }
}

module attributes {stable_mosaic.version = 11 : i64} {
  func.func @sentiment_rnn_kernel(%arg0: i32, %arg1: i32, %arg2: memref<3x8x128xf32, #tpu.memory_space<vmem>>, %arg3: memref<128x128xf32, #tpu.memory_space<vmem>>, %arg4: memref<1x128xf32, #tpu.memory_space<vmem>>, %arg5: memref<1x1xf32, #tpu.memory_space<vmem>>, %arg6: memref<8x1xf32, #tpu.memory_space<vmem>>, %arg7: memref<8x128xf32, #tpu.memory_space<vmem>>) attributes {dimension_semantics = [#tpu.dimension_semantics<parallel>, #tpu.dimension_semantics<arbitrary>], iteration_bounds = array<i64: 1, 3>, scalar_prefetch = 0 : i64, scratch_operands = 1 : i64, tpu.core_type = #tpu.core_type<tc>, window_params = [{transform_indices = @transform_0, window_bounds = array<i64: 3, 8, 128>}, {pipeline_mode = #tpu.pipeline_mode<synchronous>, transform_indices = @transform_1, window_bounds = array<i64: 128, 128>}, {pipeline_mode = #tpu.pipeline_mode<synchronous>, transform_indices = @transform_2, window_bounds = array<i64: 1, 128>}, {pipeline_mode = #tpu.pipeline_mode<synchronous>, transform_indices = @transform_3, window_bounds = array<i64: 1, 1>}, {transform_indices = @transform_4, window_bounds = array<i64: 8, 1>}]} {
    %c0_i32 = arith.constant 0 : i32
    %0 = arith.cmpi eq, %arg1, %c0_i32 : i32
    %1 = arith.extui %0 : i1 to i32
    %c0_i32_0 = arith.constant 0 : i32
    %2 = arith.cmpi ne, %1, %c0_i32_0 : i32
    scf.if %2 {
      %cst_20 = arith.constant 0.000000e+00 : f32
      %37 = vector.broadcast %cst_20 : f32 to vector<8x128xf32>
      %c0_21 = arith.constant 0 : index
      %c0_22 = arith.constant 0 : index
      %38 = vector.load %arg7[%c0_21, %c0_22] : memref<8x128xf32, #tpu.memory_space<vmem>>, vector<8x128xf32>
      tpu.vector_store %arg7[%c0_21, %c0_22], %37 {strides = array<i32>} : memref<8x128xf32, #tpu.memory_space<vmem>>, vector<8x128xf32>,
    } else {
    }
    %c0 = arith.constant 0 : index
    %c0_1 = arith.constant 0 : index
    %3 = vector.load %arg3[%c0, %c0_1] : memref<128x128xf32, #tpu.memory_space<vmem>>, vector<128x128xf32>
    %c3_i32 = arith.constant 3 : i32
    %4 = arith.muli %arg1, %c3_i32 : i32
    %c0_2 = arith.constant 0 : index
    %c0_3 = arith.constant 0 : index
    %5 = vector.load %arg7[%c0_2, %c0_3] : memref<8x128xf32, #tpu.memory_space<vmem>>, vector<8x128xf32>
    %c0_i32_4 = arith.constant 0 : i32
    %6 = arith.index_cast %c0_i32_4 : i32 to index
    %c0_5 = arith.constant 0 : index
    %c0_6 = arith.constant 0 : index
    %7 = vector.load %arg2[%6, %c0_5, %c0_6] : memref<3x8x128xf32, #tpu.memory_space<vmem>>, vector<1x8x128xf32>
    %8 = vector.shape_cast %7 : vector<1x8x128xf32> to vector<8x128xf32>
    %cst = arith.constant dense<0.000000e+00> : vector<8x128xf32>
    %9 = tpu.matmul %5, %3, %cst {dimension_numbers = #tpu.dot_dimension_numbers<[1], [0], [0], [1], [0, 0, 1, 1], [], []>} : vector<8x128xf32>, vector<128x128xf32>, vector<8x128xf32> -> vector<8x128xf32>
    %10 = arith.addf %8, %9 : vector<8x128xf32>
    %11 = math.tanh %10 : vector<8x128xf32>
    %12 = arith.addi %4, %c0_i32_4 : i32
    %c8_i32 = arith.constant 8 : i32
    %13 = arith.cmpi slt, %12, %c8_i32 : i32
    %14 = arith.select %13, %11, %5 : vector<8x128xf32>
    %c1_i32 = arith.constant 1 : i32
    %15 = arith.index_cast %c1_i32 : i32 to index
    %c0_7 = arith.constant 0 : index
    %c0_8 = arith.constant 0 : index
    %16 = vector.load %arg2[%15, %c0_7, %c0_8] : memref<3x8x128xf32, #tpu.memory_space<vmem>>, vector<1x8x128xf32>
    %17 = vector.shape_cast %16 : vector<1x8x128xf32> to vector<8x128xf32>
    %cst_9 = arith.constant dense<0.000000e+00> : vector<8x128xf32>
    %18 = tpu.matmul %14, %3, %cst_9 {dimension_numbers = #tpu.dot_dimension_numbers<[1], [0], [0], [1], [0, 0, 1, 1], [], []>} : vector<8x128xf32>, vector<128x128xf32>, vector<8x128xf32> -> vector<8x128xf32>
    %19 = arith.addf %17, %18 : vector<8x128xf32>
    %20 = math.tanh %19 : vector<8x128xf32>
    %21 = arith.addi %4, %c1_i32 : i32
    %c8_i32_10 = arith.constant 8 : i32
    %22 = arith.cmpi slt, %21, %c8_i32_10 : i32
    %23 = arith.select %22, %20, %14 : vector<8x128xf32>
    %c2_i32 = arith.constant 2 : i32
    %24 = arith.index_cast %c2_i32 : i32 to index
    %c0_11 = arith.constant 0 : index
    %c0_12 = arith.constant 0 : index
    %25 = vector.load %arg2[%24, %c0_11, %c0_12] : memref<3x8x128xf32, #tpu.memory_space<vmem>>, vector<1x8x128xf32>
    %26 = vector.shape_cast %25 : vector<1x8x128xf32> to vector<8x128xf32>
    %cst_13 = arith.constant dense<0.000000e+00> : vector<8x128xf32>
    %27 = tpu.matmul %23, %3, %cst_13 {dimension_numbers = #tpu.dot_dimension_numbers<[1], [0], [0], [1], [0, 0, 1, 1], [], []>} : vector<8x128xf32>, vector<128x128xf32>, vector<8x128xf32> -> vector<8x128xf32>
    %28 = arith.addf %26, %27 : vector<8x128xf32>
    %29 = math.tanh %28 : vector<8x128xf32>
    %30 = arith.addi %4, %c2_i32 : i32
    %c8_i32_14 = arith.constant 8 : i32
    %31 = arith.cmpi slt, %30, %c8_i32_14 : i32
    %32 = arith.select %31, %29, %23 : vector<8x128xf32>
    %c3_i32_15 = arith.constant 3 : i32
    %c0_16 = arith.constant 0 : index
    %c0_17 = arith.constant 0 : index
    %33 = vector.load %arg7[%c0_16, %c0_17] : memref<8x128xf32, #tpu.memory_space<vmem>>, vector<8x128xf32>
    tpu.vector_store %arg7[%c0_16, %c0_17], %32 {strides = array<i32>} : memref<8x128xf32, #tpu.memory_space<vmem>>, vector<8x128xf32>,
    %c2_i32_18 = arith.constant 2 : i32
    %34 = arith.cmpi eq, %arg1, %c2_i32_18 : i32
    %35 = arith.extui %34 : i1 to i32
    %c0_i32_19 = arith.constant 0 : i32
    %36 = arith.cmpi ne, %35, %c0_i32_19 : i32
    scf.if %36 {
      %c0_20 = arith.constant 0 : index
      %c0_21 = arith.constant 0 : index
      %37 = vector.load %arg4[%c0_20, %c0_21] : memref<1x128xf32, #tpu.memory_space<vmem>>, vector<1x128xf32>
      %38 = vector.broadcast %37 : vector<1x128xf32> to vector<8x128xf32>
      %39 = arith.mulf %32, %38 : vector<8x128xf32>
      %cst_22 = arith.constant dense<0.000000e+00> : vector<8xf32>
      %40 = vector.multi_reduction <add>, %39, %cst_22 [1] : vector<8x128xf32> to vector<8xf32>
      %41 = vector.shape_cast %40 : vector<8xf32> to vector<8x1xf32>
      %c0_23 = arith.constant 0 : index
      %c0_24 = arith.constant 0 : index
      %42 = vector.load %arg5[%c0_23, %c0_24] : memref<1x1xf32, #tpu.memory_space<vmem>>, vector<1x1xf32>
      %43 = vector.broadcast %42 : vector<1x1xf32> to vector<8x1xf32>
      %44 = arith.addf %41, %43 : vector<8x1xf32>
      %c0_25 = arith.constant 0 : index
      %c0_26 = arith.constant 0 : index
      %45 = vector.load %arg6[%c0_25, %c0_26] : memref<8x1xf32, #tpu.memory_space<vmem>>, vector<8x1xf32>
      tpu.vector_store %arg6[%c0_25, %c0_26], %44 {strides = array<i32>} : memref<8x1xf32, #tpu.memory_space<vmem>>, vector<8x1xf32>,
    } else {
    }
    return
  }
  func.func @transform_0(%arg0: i32, %arg1: i32) -> (i32, i32, i32) {
    %c0_i32 = arith.constant 0 : i32
    %c0_i32_0 = arith.constant 0 : i32
    return %arg1, %arg0, %c0_i32 : i32, i32, i32
  }
  func.func @transform_1(%arg0: i32, %arg1: i32) -> (i32, i32) {
    %c0_i32 = arith.constant 0 : i32
    %c0_i32_0 = arith.constant 0 : i32
    %c0_i32_1 = arith.constant 0 : i32
    return %c0_i32, %c0_i32_0 : i32, i32
  }
  func.func @transform_2(%arg0: i32, %arg1: i32) -> (i32, i32) {
    %c0_i32 = arith.constant 0 : i32
    %c0_i32_0 = arith.constant 0 : i32
    %c0_i32_1 = arith.constant 0 : i32
    return %c0_i32, %c0_i32_0 : i32, i32
  }
  func.func @transform_3(%arg0: i32, %arg1: i32) -> (i32, i32) {
    %c0_i32 = arith.constant 0 : i32
    %c0_i32_0 = arith.constant 0 : i32
    %c0_i32_1 = arith.constant 0 : i32
    return %c0_i32, %c0_i32_0 : i32, i32
  }
  func.func @transform_4(%arg0: i32, %arg1: i32) -> (i32, i32) {
    %c0_i32 = arith.constant 0 : i32
    %c0_i32_0 = arith.constant 0 : i32
    return %arg0, %c0_i32 : i32, i32
  }
}

</mosaic_0001>

<bundles_post_ra>
// kernel: tpu_custom_call.1
= control target key start
LH: loop header
LB: loop body
LE: loop exit
PB: predicated region body
PF: predicated region fallthrough
CT: control target
= control target key end

     0   :  { %s1254_s0 = inlined_call_operand.hbm [shape: f32[9,8,128], index: 0, kind: input, shape index: {}]   ;;  %s1255_s1 = inlined_call_operand.hbm [shape: f32[128,128], index: 1, kind: input, shape index: {}]   ;;  %s1256_s2 = inlined_call_operand.vmem [shape: f32[1,128], index: 2, kind: input, shape index: {}]   ;;  %s1257_s3 = inlined_call_operand.<no memory space> [shape: f32[1,1], index: 3, kind: input, shape index: {}]   ;;  %s1258_s4 = inlined_call_operand.vmem [shape: f32[8,1], index: 4, kind: output, shape index: {}]  }
   0x1   :  { %v9_v0 = vstv %s1257_s3 }
   0x2   :  { %10 = vst [vmem:[#allocation3] sm:$0x1] %v9_v0 }
   0x3   :  { %11 = vsyncpa [#allocation5], 0 }
   0x4   :  { %13 = vsyncpa [#allocation5 + $0x1], 0 }
   0x5   :  { %14 = vsyncpa [#allocation7], 0  ;;  %s1014_s17 = smov 0   ;;  %s1016_s18 = smov 0  }
   0x6   :  { %s1018_s19 = smov 0   ;;  %s1020_s20 = smov 0  }
   0x7   :  { %s1022_s21 = smov 0   ;;  %s1024_s22 = smov 0  }
   0x8 LB: > { %s617_s3 = sadd.s32 4294967295, %s977_s22   ;;  %p54_p0 = scmp.ne.s32.totalorder %s961_s18, %s957_s17  ;;  %s977_s22 = sphi %s1024_s22, %s20_s22   ;;  %s973_s21 = sphi %s1022_s21, %s1268_s21   ;;  %s969_s20 = sphi %s1020_s20, %s1267_s20   ;;  %s965_s19 = sphi %s1018_s19, %s1266_s19   ;;  %s961_s18 = sphi %s1016_s18, %s1265_s18   ;;  %s957_s17 = sphi %s1014_s17, %s1264_s17  }
   0x9   : > { %p1044_p1 = scmp.eq.s32.totalorder %s617_s3, 0  ;;  %p618_p2 = scmp.ge.s32.totalorder %s977_s22, 1 }
   0xa   : > { %p154_p3 = scmp.lt.s32.totalorder %s977_s22, 4  ;;  %s979_s26 = smov [#allocation6]  }
   0xb   : > { %p1052_p4 = por %p1044_p1, %p54_p0  ;;  %s166_s27 = sshll.u32 %s979_s26, 4  ;;  %s167_s27 = int_to_ptr.vmem [resolvable:$true] %s166_s27 }
   0xc   : > { %p1056_p5 = pnand %p618_p2, %p154_p3  ;;  %s29_s29 = sadd.s32 1, %s973_s21 }
   0xd   : > { %s880_s30 = scalar_lea.vmem %s167_s27, 2048  ;;  %p888_p12 = scmp.lt.s32.totalorder %s167_s27, %s167_s27 }
   0xe   : > { %p798_p6 = pneg %p1056_p5  ;;  %p881_p9 = scmp.ne.s32.totalorder %s167_s27, %s880_s30 }
   0xf   : > { %p889_p13 = scmp.lt.s32.totalorder %s880_s30, %s880_s30 }
  0x10   : > { %p1064_p7 = pnand %p798_p6, %p1044_p1 }
  0x11   : > { %p890_p0 = por %p889_p13, %p888_p12 }
  0x12   : > { %p871_p8 = pneg %p1064_p7 }
  0x14   : > { %p883_p10 = pnand %p881_p9, %p871_p8 }
  0x16   : > { %p884_p11 = pneg %p883_p10 }
  0x18   : > { %p891_p2 = pnand %p890_p0, %p884_p11 }
  0x1a   : > { %894 = shalt.err (!%p891_p2)
}
  0x1b   : > { %s980_s5 = smov 128   ;;  %s981_s6 = smov 8  }
  0x1c   : > { %801 = dma.hbm_to_vmem [thread:$0]  (!%p1064_p7), %s1255_s1, 2048, %s167_s27, [#allocation7], %s980_s5, %s980_s5, %s981_s6  }
  0x1d   : > { %p30_p3 = scmp.ge.s32.totalorder %s29_s29, 3  ;;  %s41_s9 = sadd.s32 1, %s965_s19 }
  0x1e   : > { %p48_p6 = scmp.ne.s32.totalorder %s965_s19, %s961_s18  ;;  %p49_p8 = scmp.eq.s32.totalorder %s977_s22, 0 }
  0x1f   : > { %s1270_s29 = smov (%p30_p3, %s29_s29), 0  ;;  %p807_p10 = scmp.lt.s32.totalorder %s977_s22, 3 }
  0x20   : > { %p50_p9 = por %p49_p8, %p48_p6  ;;  %s36_s10 = ssub.s32 %s973_s21, %s1270_s29 }
  0x21   : > { %s186_s11 = sand.u32 1, %s965_s19   ;;  %p39_p11 = scmp.eq.s32.totalorder %s36_s10, 0 }
  0x22   : > { %s790_s12 = smul.u32 24, %s186_s11  ;;  %p1089_p12 = pnand %p807_p10, %p50_p9 }
  0x23   : > { %s1094_s14 = scalar_select %p39_p11, %s965_s19, %s41_s9  }
  0x24   : > { %s633_s15 = smul.u32 384, %s973_s21  ;;  %s190_s16 = scalar_lea.vmem [#allocation4], %s790_s12 }
  0x25   : > { %s198_s17 = sshll.u32 %s190_s16, 4  ;;  %s187_s28 = scalar_lea.sflag [#allocation5], %s186_s11  ;;  %s199_s17 = int_to_ptr.vmem [resolvable:$true] %s198_s17 }
  0x26   : > { %s197_s27 = scalar_lea.hbm %s1254_s0, %s633_s15  ;;  %p897_p7 = pneg %p1089_p12 }
  0x27   : > { %s908_s30 = scalar_lea.vmem %s199_s17, 384  ;;  %s982_s7 = smov [#allocation4]  }
  0x28   : > { %p909_p13 = scmp.ne.s32.totalorder %s199_s17, %s908_s30  ;;  %s913_s8 = sshll.u32 %s982_s7, 4  ;;  %s914_s8 = int_to_ptr.vmem [resolvable:$false] %s913_s8 }
  0x29   : > { %s915_s9 = scalar_lea.vmem %s914_s8, 768  ;;  %p916_p3 = scmp.lt.s32.totalorder %s199_s17, %s914_s8 }
  0x2a   : > { %p911_p0 = pnand %p909_p13, %p897_p7  ;;  %p917_p6 = scmp.lt.s32.totalorder %s915_s9, %s908_s30 }
  0x2c   : > { %p912_p2 = pneg %p911_p0  ;;  %p918_p8 = por %p917_p6, %p916_p3 }
  0x2e   : > { %p919_p9 = pnand %p918_p8, %p912_p2 }
  0x30   : > { %922 = shalt.err (!%p919_p9)
}
  0x31   : > { %805 = dma.hbm_to_vmem [thread:$0]  (!%p1089_p12), %s197_s27, 384, %s199_s17, %s187_s28, %s980_s5, %s980_s5, %s981_s6  }
  0x32   : > { %210 = sbr.rel (%p1056_p5) target bundleno = 875 (0x36b), region = 36  ;;  %s212_s10 = sand.u32 (!%p1056_p5), 1, %s961_s18  }
  0x33   : > { %s791_s11 = smul.u32 (!%p1056_p5), 24, %s212_s10  ;;  %s213_s12 = scalar_lea.sflag (!%p1056_p5), [#allocation5], %s212_s10 }
  0x35   : > { %s1110_s15 = scalar_lea.vmem (!%p1056_p5), [#allocation4], %s791_s11 }
  0x37   : > { %948 = dma.done.wait (%p1052_p4), %s213_s12, 384  }
  0x38   : > { %950 = vsyncadd (%p1052_p4), %s213_s12, 4294966912 }
  0x39   : > { %952 = dma.done.wait (%p1044_p1), [#allocation7], 2048  }
  0x3a   : > { %954 = vsyncadd (%p1044_p1), [#allocation7], 4294965248  ;;  %p624_p5 = scmp.ne.s32.totalorder %s969_s20, 0 }
  0x3c   : > { %252 = sbr.rel (%p624_p5) target bundleno = 67 (0x43), region = 48 }
  0x41   : > { %v983_v1 = vmov 0.0  }
  0x42   : > { %253 = vst [vmem:[#allocation2] sm:$0xff] %v983_v1 }
  0x43 PF: > { %v1121_v2 = vld [vmem:[#allocation6 + $0x78] sm:$0xff]  ;;  %v984_v3 = vmov 0.0   ;;  %v1124_v4 = vld [vmem:[#allocation6 + $0x70] sm:$0xff]  ;;  %vm985_vm0 = vmmov 0   ;;  %v1131_v5 = vld [vmem:[#allocation6 + $0x68] sm:$0xff]  ;;  %s1222_s23 = smul.u32 3, %s969_s20 }
  0x44   : > { %685 = vmatprep.subr.mxu0 %v984_v3  ;;  %717 = vmatprep.mubr.msk.f32.mxu0 %vm985_vm0, %v984_v3  ;;  %v1137_v6 = vld [vmem:[#allocation6 + $0x60] sm:$0xff]  ;;  %v1143_v7 = vld [vmem:[#allocation6 + $0x58] sm:$0xff]  ;;  %v1149_v8 = vld [vmem:[#allocation6 + $0x50] sm:$0xff]  ;;  %p627_p11 = scmp.ne.s32.totalorder %s969_s20, 2 }
  0x45   : > { %686 = vmatpush3.msra.mxu0 %v1121_v2  ;;  %720 = vmatprep.subr.mxu1 %v984_v3  ;;  %v1155_v9 = vld [vmem:[#allocation6 + $0x48] sm:$0xff]  ;;  %v1161_v10 = vld [vmem:[#allocation6 + $0x40] sm:$0xff]  ;;  %v1167_v11 = vld [vmem:[#allocation6 + $0x38] sm:$0xff]  ;;  %p345_p1 = scmp.lt.s32.totalorder %s1222_s23, 8  ;;  %s424_s25 = sadd.s32 1, %s1222_s23 }
  0x46   : > { %687 = vmatprep.subr.mxu0 %v984_v3  ;;  %721 = vmatpush3.msra.mxu1 %v1121_v2  ;;  %v260_v12 = vld [vmem:[#allocation6 + $0x30] sm:$0xff]  ;;  %v259_v13 = vld [vmem:[#allocation6 + $0x28] sm:$0xff]  ;;  %v258_v14 = vld [vmem:[#allocation6 + $0x20] sm:$0xff]  ;;  %p425_p4 = scmp.lt.s32.totalorder %s424_s25, 8  ;;  %s504_s6 = sadd.s32 2, %s1222_s23 }
  0x47   : > { %688 = vmatpush3.msra.mxu0 %v1124_v4  ;;  %722 = vmatprep.subr.mxu1 %v984_v3  ;;  %v257_v15 = vld [vmem:[#allocation6 + $0x18] sm:$0xff]  ;;  %v256_v16 = vld [vmem:[#allocation6 + $0x10] sm:$0xff]  ;;  %v255_v17 = vld [vmem:[#allocation6 + $0x8] sm:$0xff]  ;;  %s346_s24 = scalar_select %p345_p1, 1, 0 }
  0x48   : > { %689 = vmatprep.subr.mxu0 %v984_v3  ;;  %723 = vmatpush3.msra.mxu1 %v1124_v4  ;;  %v254_v18 = vld [vmem:[#allocation6] sm:$0xff]  ;;  %v272_v20 = vld [vmem:[%s1110_s15] sm:$0xff]  ;;  %v625_v27 = vld [vmem:[%s1110_s15 + $0x8] sm:$0xff]  ;;  %s426_s5 = scalar_select %p425_p4, 1, 0 }
  0x49   : > { %690 = vmatpush3.msra.mxu0 %v1131_v5  ;;  %724 = vmatprep.subr.mxu1 %v984_v3  ;;  %v271_v19 = vld [vmem:[#allocation2] sm:$0xff]  ;;  %v347_v24 = vstv %s346_s24  ;;  %p505_p10 = scmp.lt.s32.totalorder %s504_s6, 8 }
  0x4a   : > { %691 = vmatprep.subr.mxu0 %v984_v3  ;;  %725 = vmatpush3.msra.mxu1 %v1131_v5  ;;  %vm348_vm1 = vcmp.eq.s32.totalorder %v347_v24, 1  ;;  %v427_v31 = vstv %s426_s5  ;;  %v626_v34 = vld [vmem:[%s1110_s15 + $0x10] sm:$0xff] }
  0x4b   : > { %692 = vmatpush3.msra.mxu0 %v1137_v6  ;;  %726 = vmatprep.subr.mxu1 %v984_v3  ;;  %vm428_vm2 = vcmp.eq.s32.totalorder %v427_v31, 1  ;;  %s506_s13 = scalar_select %p505_p10, 1, 0 }
  0x4c   : > { %693 = vmatprep.subr.mxu0 %v984_v3  ;;  %727 = vmatpush3.msra.mxu1 %v1137_v6 }
  0x4d   : > { %694 = vmatpush3.msra.mxu0 %v1143_v7  ;;  %728 = vmatprep.subr.mxu1 %v984_v3  ;;  %v507_v38 = vstv %s506_s13 }
  0x4e   : > { %695 = vmatprep.subr.mxu0 %v984_v3  ;;  %729 = vmatpush3.msra.mxu1 %v1143_v7  ;;  %vm508_vm3 = vcmp.eq.s32.totalorder %v507_v38, 1 }
  0x4f   : > { %696 = vmatpush3.msra.mxu0 %v1149_v8  ;;  %730 = vmatprep.subr.mxu1 %v984_v3 }
  0x50   : > { %697 = vmatprep.subr.mxu0 %v984_v3  ;;  %731 = vmatpush3.msra.mxu1 %v1149_v8 }
  0x51   : > { %698 = vmatpush3.msra.mxu0 %v1155_v9  ;;  %732 = vmatprep.subr.mxu1 %v984_v3 }
  0x52   : > { %699 = vmatprep.subr.mxu0 %v984_v3  ;;  %733 = vmatpush3.msra.mxu1 %v1155_v9 }
  0x53   : > { %700 = vmatpush3.msra.mxu0 %v1161_v10  ;;  %734 = vmatprep.subr.mxu1 %v984_v3 }
  0x54   : > { %701 = vmatprep.subr.mxu0 %v984_v3  ;;  %735 = vmatpush3.msra.mxu1 %v1161_v10 }
  0x55   : > { %702 = vmatpush3.msra.mxu0 %v1167_v11  ;;  %736 = vmatprep.subr.mxu1 %v984_v3 }
  0x56   : > { %703 = vmatprep.subr.mxu0 %v984_v3  ;;  %737 = vmatpush3.msra.mxu1 %v1167_v11 }
  0x57   : > { %704 = vmatpush3.msra.mxu0 %v260_v12  ;;  %738 = vmatprep.subr.mxu1 %v984_v3 }
  0x58   : > { %705 = vmatprep.subr.mxu0 %v984_v3  ;;  %739 = vmatpush3.msra.mxu1 %v260_v12 }
  0x59   : > { %706 = vmatpush3.msra.mxu0 %v259_v13  ;;  %740 = vmatprep.subr.mxu1 %v984_v3 }
  0x5a   : > { %707 = vmatprep.subr.mxu0 %v984_v3  ;;  %741 = vmatpush3.msra.mxu1 %v259_v13 }
  0x5b   : > { %708 = vmatpush3.msra.mxu0 %v258_v14  ;;  %742 = vmatprep.subr.mxu1 %v984_v3 }
  0x5c   : > { %709 = vmatprep.subr.mxu0 %v984_v3  ;;  %743 = vmatpush3.msra.mxu1 %v258_v14 }
  0x5d   : > { %710 = vmatpush3.msra.mxu0 %v257_v15  ;;  %744 = vmatprep.subr.mxu1 %v984_v3 }
  0x5e   : > { %711 = vmatprep.subr.mxu0 %v984_v3  ;;  %745 = vmatpush3.msra.mxu1 %v257_v15 }
  0x5f   : > { %712 = vmatpush3.msra.mxu0 %v256_v16  ;;  %746 = vmatprep.subr.mxu1 %v984_v3 }
  0x60   : > { %713 = vmatprep.subr.mxu0 %v984_v3  ;;  %747 = vmatpush3.msra.mxu1 %v256_v16 }
  0x61   : > { %714 = vmatpush3.msra.mxu0 %v255_v17  ;;  %748 = vmatprep.subr.mxu1 %v984_v3 }
  0x62   : > { %715 = vmatprep.subr.mxu0 %v984_v3  ;;  %749 = vmatpush3.msra.mxu1 %v255_v17 }
  0x63   : > { %716 = vmatpush3.msra.mxu0 %v254_v18  ;;  %750 = vmatprep.subr.mxu1 %v984_v3 }
  0x64   : > { %718 = vmatmul.mubr.f32.vlgmr.msra.gmra.mxu0 %v271_v19  ;;  %751 = vmatpush3.msra.mxu1 %v254_v18 }
  0x65   : > { %752 = vmatprep.mubr.msk.f32.mxu1 %vm985_vm0, %v984_v3  ;;  %755 = vmatprep.subr.mxu0 %v984_v3 }
  0x66   : > { %756 = vmatpush3.msra.mxu0 %v1121_v2  ;;  %787 = vmatprep.mubr.msk.f32.mxu0 %vm985_vm0, %v984_v3 }
  0x67   : > { %757 = vmatprep.subr.mxu0 %v984_v3 }
  0x68   : > { %758 = vmatpush3.msra.mxu0 %v1124_v4 }
  0x69   : > { %759 = vmatprep.subr.mxu0 %v984_v3 }
  0x6a   : > { %760 = vmatpush3.msra.mxu0 %v1131_v5 }
  0x6b   : > { %761 = vmatprep.subr.mxu0 %v984_v3 }
  0x6c   : > { %762 = vmatpush3.msra.mxu0 %v1137_v6 }
  0x6d   : > { %763 = vmatprep.subr.mxu0 %v984_v3 }
  0x6e   : > { %764 = vmatpush3.msra.mxu0 %v1143_v7 }
  0x6f   : > { %765 = vmatprep.subr.mxu0 %v984_v3 }
  0x70   : > { %766 = vmatpush3.msra.mxu0 %v1149_v8 }
  0x71   : > { %767 = vmatprep.subr.mxu0 %v984_v3 }
  0x72   : > { %768 = vmatpush3.msra.mxu0 %v1155_v9 }
  0x73   : > { %769 = vmatprep.subr.mxu0 %v984_v3 }
  0x74   : > { %770 = vmatpush3.msra.mxu0 %v1161_v10 }
  0x75   : > { %771 = vmatprep.subr.mxu0 %v984_v3 }
  0x76   : > { %772 = vmatpush3.msra.mxu0 %v1167_v11 }
  0x77   : > { %773 = vmatprep.subr.mxu0 %v984_v3 }
  0x78   : > { %774 = vmatpush3.msra.mxu0 %v260_v12 }
  0x79   : > { %775 = vmatprep.subr.mxu0 %v984_v3 }
  0x7a   : > { %776 = vmatpush3.msra.mxu0 %v259_v13 }
  0x7b   : > { %777 = vmatprep.subr.mxu0 %v984_v3 }
  0x7c   : > { %778 = vmatpush3.msra.mxu0 %v258_v14 }
  0x7d   : > { %779 = vmatprep.subr.mxu0 %v984_v3 }
  0x7e   : > { %780 = vmatpush3.msra.mxu0 %v257_v15 }
  0x7f   : > { %781 = vmatprep.subr.mxu0 %v984_v3 }
  0x80   : > { %782 = vmatpush3.msra.mxu0 %v256_v16 }
  0x81   : > { %783 = vmatprep.subr.mxu0 %v984_v3 }
  0x82   : > { %784 = vmatpush3.msra.mxu0 %v255_v17 }
  0x83   : > { %785 = vmatprep.subr.mxu0 %v984_v3 }
  0x84   : > { %786 = vmatpush3.msra.mxu0 %v254_v18 }
 0x124   : > { %v339_v21 = vpop.f32.mrf.mxu0 }
 0x125   : > { %v343_v22 = vadd.f32 %v339_v21, %v272_v20 }
 0x126   : > { %v719_v23 = vpop.f32.mrf.mxu0 }
 0x127   : > { %863 = vtanh.f32 %v343_v22 }
 0x134   : > { %v864_v25 = vpop.eup %863 }
 0x135   : > { %v349_v26 = vsel %vm348_vm1, %v864_v25, %v271_v19 }
 0x136   : > { %753 = vmatmul.mubr.f32.vlgmr.msra.gmra.mxu1 %v349_v26 }
 0x1f6   : > { %v418_v28 = vpop.f32.mrf.mxu1 }
 0x1f7   : > { %v422_v29 = vadd.f32 %v625_v27, %v418_v28 }
 0x1f8   : > { %v754_v30 = vpop.f32.mrf.mxu1 }
 0x1f9   : > { %865 = vtanh.f32 %v422_v29 }
 0x206   : > { %v866_v32 = vpop.eup %865 }
 0x207   : > { %v429_v33 = vsel %vm428_vm2, %v866_v32, %v349_v26 }
 0x208   : > { %788 = vmatmul.mubr.f32.vlgmr.msra.gmra.mxu0 %v429_v33 }
 0x2c8   : > { %v498_v35 = vpop.f32.mrf.mxu0 }
 0x2c9   : > { %v502_v36 = vadd.f32 %v626_v34, %v498_v35 }
 0x2ca   : > { %v789_v37 = vpop.f32.mrf.mxu0 }
 0x2cb   : > { %867 = vtanh.f32 %v502_v36 }
 0x2d6   : > { %514 = sbr.rel (%p627_p11) target bundleno = 875 (0x36b), region = 52 }
 0x2d8   : > { %v868_v39 = vpop.eup %867 }
 0x2d9   : > { %v509_v40 = vsel %vm508_vm3, %v868_v39, %v429_v33 }
 0x2da   : > { %510 = vst [vmem:[#allocation2] sm:$0xff] %v509_v40 }
 0x2db   : > { %v628_v41 = vld [vmem:[%s1256_s2] ss:$0 sm:$0xff]  ;;  %v629_v43 = vld [vmem:[#allocation3] ss:$0 sm:$0xff]  ;;  %vm533_vm4 = vcmask 7168  }
 0x2dc   : > { %v522_v42 = vmul.f32 %v628_v41, %v509_v40 }
 0x2de   : > { %523 = vadd.xlane.f32.xlu0 %v522_v42 }
 0x367   : > { %v524_v44 = vpop.xlane.xlu0 %523 }
 0x368   : > { %v532_v45 = vadd.f32 %v629_v43, %v524_v44 }
 0x36a   : > { %534 = vst.msk [vmem:[%s1258_s4] sm:$0xff] %vm533_vm4, %v532_v45 }
 0x36b PF: > { %s20_s22 = sadd.s32 1, %s977_s22   ;;  %s1264_s17 = smov %s961_s18 }
 0x36c   : > { %p17_p12 = scmp.ge.s32.totalorder %s20_s22, 5   ;;  %s1265_s18 = smov %s965_s19 }
 0x36d   : > { %s1266_s19 = smov %s1094_s14  ;;  %s1267_s20 = smov %s973_s21 }
 0x36e   : > { %s1268_s21 = smov %s1270_s29  ;;  %19 = sbr.rel (!%p17_p12) target bundleno = 8 (0x8), region = 90 }
 0x373   :  { %554 = vsyncpa [#allocation5], 1 }
 0x374   :  { %556 = vsyncpa [#allocation5 + $0x1], 1 }
 0x375   :  { %557 = vsyncpa [#allocation7], 1 }

// kernel: tpu_custom_call.1
= control target key start
LH: loop header
LB: loop body
LE: loop exit
PB: predicated region body
PF: predicated region fallthrough
CT: control target
= control target key end

     0   :  { %s1254_s0 = inlined_call_operand.hbm [shape: f32[9,8,128], index: 0, kind: input, shape index: {}]   ;;  %s1255_s1 = inlined_call_operand.hbm [shape: f32[128,128], index: 1, kind: input, shape index: {}]   ;;  %s1256_s2 = inlined_call_operand.vmem [shape: f32[1,128], index: 2, kind: input, shape index: {}]   ;;  %s1257_s3 = inlined_call_operand.<no memory space> [shape: f32[1,1], index: 3, kind: input, shape index: {}]   ;;  %s1258_s4 = inlined_call_operand.vmem [shape: f32[8,1], index: 4, kind: output, shape index: {}]  }
   0x1   :  { %v9_v0 = vstv %s1257_s3 }
   0x2   :  { %10 = vst [vmem:[#allocation3] sm:$0x1] %v9_v0 }
   0x3   :  { %11 = vsyncpa [#allocation5], 0 }
   0x4   :  { %13 = vsyncpa [#allocation5 + $0x1], 0 }
   0x5   :  { %14 = vsyncpa [#allocation7], 0  ;;  %s1014_s17 = smov 0   ;;  %s1016_s18 = smov 0  }
   0x6   :  { %s1018_s19 = smov 0   ;;  %s1020_s20 = smov 0  }
   0x7   :  { %s1022_s21 = smov 0   ;;  %s1024_s22 = smov 0  }
   0x8 LB: > { %s617_s3 = sadd.s32 4294967295, %s977_s22   ;;  %p54_p0 = scmp.ne.s32.totalorder %s961_s18, %s957_s17  ;;  %s977_s22 = sphi %s1024_s22, %s20_s22   ;;  %s973_s21 = sphi %s1022_s21, %s1268_s21   ;;  %s969_s20 = sphi %s1020_s20, %s1267_s20   ;;  %s965_s19 = sphi %s1018_s19, %s1266_s19   ;;  %s961_s18 = sphi %s1016_s18, %s1265_s18   ;;  %s957_s17 = sphi %s1014_s17, %s1264_s17  }
   0x9   : > { %p1044_p1 = scmp.eq.s32.totalorder %s617_s3, 0  ;;  %p618_p2 = scmp.ge.s32.totalorder %s977_s22, 1 }
   0xa   : > { %p154_p3 = scmp.lt.s32.totalorder %s977_s22, 4  ;;  %s979_s26 = smov [#allocation6]  }
   0xb   : > { %p1052_p4 = por %p1044_p1, %p54_p0  ;;  %s166_s27 = sshll.u32 %s979_s26, 4  ;;  %s167_s27 = int_to_ptr.vmem [resolvable:$true] %s166_s27 }
   0xc   : > { %p1056_p5 = pnand %p618_p2, %p154_p3  ;;  %s29_s29 = sadd.s32 1, %s973_s21 }
   0xd   : > { %s880_s30 = scalar_lea.vmem %s167_s27, 2048  ;;  %p888_p12 = scmp.lt.s32.totalorder %s167_s27, %s167_s27 }
   0xe   : > { %p798_p6 = pneg %p1056_p5  ;;  %p881_p9 = scmp.ne.s32.totalorder %s167_s27, %s880_s30 }
   0xf   : > { %p889_p13 = scmp.lt.s32.totalorder %s880_s30, %s880_s30 }
  0x10   : > { %p1064_p7 = pnand %p798_p6, %p1044_p1 }
  0x11   : > { %p890_p0 = por %p889_p13, %p888_p12 }
  0x12   : > { %p871_p8 = pneg %p1064_p7 }
  0x14   : > { %p883_p10 = pnand %p881_p9, %p871_p8 }
  0x16   : > { %p884_p11 = pneg %p883_p10 }
  0x18   : > { %p891_p2 = pnand %p890_p0, %p884_p11 }
  0x1a   : > { %894 = shalt.err (!%p891_p2)
}
  0x1b   : > { %s980_s5 = smov 128   ;;  %s981_s6 = smov 8  }
  0x1c   : > { %801 = dma.hbm_to_vmem [thread:$0]  (!%p1064_p7), %s1255_s1, 2048, %s167_s27, [#allocation7], %s980_s5, %s980_s5, %s981_s6  }
  0x1d   : > { %p30_p3 = scmp.ge.s32.totalorder %s29_s29, 3  ;;  %s41_s9 = sadd.s32 1, %s965_s19 }
  0x1e   : > { %p48_p6 = scmp.ne.s32.totalorder %s965_s19, %s961_s18  ;;  %p49_p8 = scmp.eq.s32.totalorder %s977_s22, 0 }
  0x1f   : > { %s1270_s29 = smov (%p30_p3, %s29_s29), 0  ;;  %p807_p10 = scmp.lt.s32.totalorder %s977_s22, 3 }
  0x20   : > { %p50_p9 = por %p49_p8, %p48_p6  ;;  %s36_s10 = ssub.s32 %s973_s21, %s1270_s29 }
  0x21   : > { %s186_s11 = sand.u32 1, %s965_s19   ;;  %p39_p11 = scmp.eq.s32.totalorder %s36_s10, 0 }
  0x22   : > { %s790_s12 = smul.u32 24, %s186_s11  ;;  %p1089_p12 = pnand %p807_p10, %p50_p9 }
  0x23   : > { %s1094_s14 = scalar_select %p39_p11, %s965_s19, %s41_s9  }
  0x24   : > { %s633_s15 = smul.u32 384, %s973_s21  ;;  %s190_s16 = scalar_lea.vmem [#allocation4], %s790_s12 }
  0x25   : > { %s198_s17 = sshll.u32 %s190_s16, 4  ;;  %s187_s28 = scalar_lea.sflag [#allocation5], %s186_s11  ;;  %s199_s17 = int_to_ptr.vmem [resolvable:$true] %s198_s17 }
  0x26   : > { %s197_s27 = scalar_lea.hbm %s1254_s0, %s633_s15  ;;  %p897_p7 = pneg %p1089_p12 }
  0x27   : > { %s908_s30 = scalar_lea.vmem %s199_s17, 384  ;;  %s982_s7 = smov [#allocation4]  }
  0x28   : > { %p909_p13 = scmp.ne.s32.totalorder %s199_s17, %s908_s30  ;;  %s913_s8 = sshll.u32 %s982_s7, 4  ;;  %s914_s8 = int_to_ptr.vmem [resolvable:$false] %s913_s8 }
  0x29   : > { %s915_s9 = scalar_lea.vmem %s914_s8, 768  ;;  %p916_p3 = scmp.lt.s32.totalorder %s199_s17, %s914_s8 }
  0x2a   : > { %p911_p0 = pnand %p909_p13, %p897_p7  ;;  %p917_p6 = scmp.lt.s32.totalorder %s915_s9, %s908_s30 }
  0x2c   : > { %p912_p2 = pneg %p911_p0  ;;  %p918_p8 = por %p917_p6, %p916_p3 }
  0x2e   : > { %p919_p9 = pnand %p918_p8, %p912_p2 }
  0x30   : > { %922 = shalt.err (!%p919_p9)
}
  0x31   : > { %805 = dma.hbm_to_vmem [thread:$0]  (!%p1089_p12), %s197_s27, 384, %s199_s17, %s187_s28, %s980_s5, %s980_s5, %s981_s6  }
  0x32   : > { %210 = sbr.rel (%p1056_p5) target bundleno = 875 (0x36b), region = 36  ;;  %s212_s10 = sand.u32 (!%p1056_p5), 1, %s961_s18  }
  0x33   : > { %s791_s11 = smul.u32 (!%p1056_p5), 24, %s212_s10  ;;  %s213_s12 = scalar_lea.sflag (!%p1056_p5), [#allocation5], %s212_s10 }
  0x35   : > { %s1110_s15 = scalar_lea.vmem (!%p1056_p5), [#allocation4], %s791_s11 }
  0x37   : > { %948 = dma.done.wait (%p1052_p4), %s213_s12, 384  }
  0x38   : > { %950 = vsyncadd (%p1052_p4), %s213_s12, 4294966912 }
  0x39   : > { %952 = dma.done.wait (%p1044_p1), [#allocation7], 2048  }
  0x3a   : > { %954 = vsyncadd (%p1044_p1), [#allocation7], 4294965248  ;;  %p624_p5 = scmp.ne.s32.totalorder %s969_s20, 0 }
  0x3c   : > { %252 = sbr.rel (%p624_p5) target bundleno = 67 (0x43), region = 48 }
  0x41   : > { %v983_v1 = vmov 0.0  }
  0x42   : > { %253 = vst [vmem:[#allocation2] sm:$0xff] %v983_v1 }
  0x43 PF: > { %v1121_v2 = vld [vmem:[#allocation6 + $0x78] sm:$0xff]  ;;  %v984_v3 = vmov 0.0   ;;  %v1124_v4 = vld [vmem:[#allocation6 + $0x70] sm:$0xff]  ;;  %vm985_vm0 = vmmov 0   ;;  %v1131_v5 = vld [vmem:[#allocation6 + $0x68] sm:$0xff]  ;;  %s1222_s23 = smul.u32 3, %s969_s20 }
  0x44   : > { %685 = vmatprep.subr.mxu0 %v984_v3  ;;  %717 = vmatprep.mubr.msk.f32.mxu0 %vm985_vm0, %v984_v3  ;;  %v1137_v6 = vld [vmem:[#allocation6 + $0x60] sm:$0xff]  ;;  %v1143_v7 = vld [vmem:[#allocation6 + $0x58] sm:$0xff]  ;;  %v1149_v8 = vld [vmem:[#allocation6 + $0x50] sm:$0xff]  ;;  %p627_p11 = scmp.ne.s32.totalorder %s969_s20, 2 }
  0x45   : > { %686 = vmatpush3.msra.mxu0 %v1121_v2  ;;  %720 = vmatprep.subr.mxu1 %v984_v3  ;;  %v1155_v9 = vld [vmem:[#allocation6 + $0x48] sm:$0xff]  ;;  %v1161_v10 = vld [vmem:[#allocation6 + $0x40] sm:$0xff]  ;;  %v1167_v11 = vld [vmem:[#allocation6 + $0x38] sm:$0xff]  ;;  %p345_p1 = scmp.lt.s32.totalorder %s1222_s23, 8  ;;  %s424_s25 = sadd.s32 1, %s1222_s23 }
  0x46   : > { %687 = vmatprep.subr.mxu0 %v984_v3  ;;  %721 = vmatpush3.msra.mxu1 %v1121_v2  ;;  %v260_v12 = vld [vmem:[#allocation6 + $0x30] sm:$0xff]  ;;  %v259_v13 = vld [vmem:[#allocation6 + $0x28] sm:$0xff]  ;;  %v258_v14 = vld [vmem:[#allocation6 + $0x20] sm:$0xff]  ;;  %p425_p4 = scmp.lt.s32.totalorder %s424_s25, 8  ;;  %s504_s6 = sadd.s32 2, %s1222_s23 }
  0x47   : > { %688 = vmatpush3.msra.mxu0 %v1124_v4  ;;  %722 = vmatprep.subr.mxu1 %v984_v3  ;;  %v257_v15 = vld [vmem:[#allocation6 + $0x18] sm:$0xff]  ;;  %v256_v16 = vld [vmem:[#allocation6 + $0x10] sm:$0xff]  ;;  %v255_v17 = vld [vmem:[#allocation6 + $0x8] sm:$0xff]  ;;  %s346_s24 = scalar_select %p345_p1, 1, 0 }
  0x48   : > { %689 = vmatprep.subr.mxu0 %v984_v3  ;;  %723 = vmatpush3.msra.mxu1 %v1124_v4  ;;  %v254_v18 = vld [vmem:[#allocation6] sm:$0xff]  ;;  %v272_v20 = vld [vmem:[%s1110_s15] sm:$0xff]  ;;  %v625_v27 = vld [vmem:[%s1110_s15 + $0x8] sm:$0xff]  ;;  %s426_s5 = scalar_select %p425_p4, 1, 0 }
  0x49   : > { %690 = vmatpush3.msra.mxu0 %v1131_v5  ;;  %724 = vmatprep.subr.mxu1 %v984_v3  ;;  %v271_v19 = vld [vmem:[#allocation2] sm:$0xff]  ;;  %v347_v24 = vstv %s346_s24  ;;  %p505_p10 = scmp.lt.s32.totalorder %s504_s6, 8 }
  0x4a   : > { %691 = vmatprep.subr.mxu0 %v984_v3  ;;  %725 = vmatpush3.msra.mxu1 %v1131_v5  ;;  %vm348_vm1 = vcmp.eq.s32.totalorder %v347_v24, 1  ;;  %v427_v31 = vstv %s426_s5  ;;  %v626_v34 = vld [vmem:[%s1110_s15 + $0x10] sm:$0xff] }
  0x4b   : > { %692 = vmatpush3.msra.mxu0 %v1137_v6  ;;  %726 = vmatprep.subr.mxu1 %v984_v3  ;;  %vm428_vm2 = vcmp.eq.s32.totalorder %v427_v31, 1  ;;  %s506_s13 = scalar_select %p505_p10, 1, 0 }
  0x4c   : > { %693 = vmatprep.subr.mxu0 %v984_v3  ;;  %727 = vmatpush3.msra.mxu1 %v1137_v6 }
  0x4d   : > { %694 = vmatpush3.msra.mxu0 %v1143_v7  ;;  %728 = vmatprep.subr.mxu1 %v984_v3  ;;  %v507_v38 = vstv %s506_s13 }
  0x4e   : > { %695 = vmatprep.subr.mxu0 %v984_v3  ;;  %729 = vmatpush3.msra.mxu1 %v1143_v7  ;;  %vm508_vm3 = vcmp.eq.s32.totalorder %v507_v38, 1 }
  0x4f   : > { %696 = vmatpush3.msra.mxu0 %v1149_v8  ;;  %730 = vmatprep.subr.mxu1 %v984_v3 }
  0x50   : > { %697 = vmatprep.subr.mxu0 %v984_v3  ;;  %731 = vmatpush3.msra.mxu1 %v1149_v8 }
  0x51   : > { %698 = vmatpush3.msra.mxu0 %v1155_v9  ;;  %732 = vmatprep.subr.mxu1 %v984_v3 }
  0x52   : > { %699 = vmatprep.subr.mxu0 %v984_v3  ;;  %733 = vmatpush3.msra.mxu1 %v1155_v9 }
  0x53   : > { %700 = vmatpush3.msra.mxu0 %v1161_v10  ;;  %734 = vmatprep.subr.mxu1 %v984_v3 }
  0x54   : > { %701 = vmatprep.subr.mxu0 %v984_v3  ;;  %735 = vmatpush3.msra.mxu1 %v1161_v10 }
  0x55   : > { %702 = vmatpush3.msra.mxu0 %v1167_v11  ;;  %736 = vmatprep.subr.mxu1 %v984_v3 }
  0x56   : > { %703 = vmatprep.subr.mxu0 %v984_v3  ;;  %737 = vmatpush3.msra.mxu1 %v1167_v11 }
  0x57   : > { %704 = vmatpush3.msra.mxu0 %v260_v12  ;;  %738 = vmatprep.subr.mxu1 %v984_v3 }
  0x58   : > { %705 = vmatprep.subr.mxu0 %v984_v3  ;;  %739 = vmatpush3.msra.mxu1 %v260_v12 }
  0x59   : > { %706 = vmatpush3.msra.mxu0 %v259_v13  ;;  %740 = vmatprep.subr.mxu1 %v984_v3 }
  0x5a   : > { %707 = vmatprep.subr.mxu0 %v984_v3  ;;  %741 = vmatpush3.msra.mxu1 %v259_v13 }
  0x5b   : > { %708 = vmatpush3.msra.mxu0 %v258_v14  ;;  %742 = vmatprep.subr.mxu1 %v984_v3 }
  0x5c   : > { %709 = vmatprep.subr.mxu0 %v984_v3  ;;  %743 = vmatpush3.msra.mxu1 %v258_v14 }
  0x5d   : > { %710 = vmatpush3.msra.mxu0 %v257_v15  ;;  %744 = vmatprep.subr.mxu1 %v984_v3 }
  0x5e   : > { %711 = vmatprep.subr.mxu0 %v984_v3  ;;  %745 = vmatpush3.msra.mxu1 %v257_v15 }
  0x5f   : > { %712 = vmatpush3.msra.mxu0 %v256_v16  ;;  %746 = vmatprep.subr.mxu1 %v984_v3 }
  0x60   : > { %713 = vmatprep.subr.mxu0 %v984_v3  ;;  %747 = vmatpush3.msra.mxu1 %v256_v16 }
  0x61   : > { %714 = vmatpush3.msra.mxu0 %v255_v17  ;;  %748 = vmatprep.subr.mxu1 %v984_v3 }
  0x62   : > { %715 = vmatprep.subr.mxu0 %v984_v3  ;;  %749 = vmatpush3.msra.mxu1 %v255_v17 }
  0x63   : > { %716 = vmatpush3.msra.mxu0 %v254_v18  ;;  %750 = vmatprep.subr.mxu1 %v984_v3 }
  0x64   : > { %718 = vmatmul.mubr.f32.vlgmr.msra.gmra.mxu0 %v271_v19  ;;  %751 = vmatpush3.msra.mxu1 %v254_v18 }
  0x65   : > { %752 = vmatprep.mubr.msk.f32.mxu1 %vm985_vm0, %v984_v3  ;;  %755 = vmatprep.subr.mxu0 %v984_v3 }
  0x66   : > { %756 = vmatpush3.msra.mxu0 %v1121_v2  ;;  %787 = vmatprep.mubr.msk.f32.mxu0 %vm985_vm0, %v984_v3 }
  0x67   : > { %757 = vmatprep.subr.mxu0 %v984_v3 }
  0x68   : > { %758 = vmatpush3.msra.mxu0 %v1124_v4 }
  0x69   : > { %759 = vmatprep.subr.mxu0 %v984_v3 }
  0x6a   : > { %760 = vmatpush3.msra.mxu0 %v1131_v5 }
  0x6b   : > { %761 = vmatprep.subr.mxu0 %v984_v3 }
  0x6c   : > { %762 = vmatpush3.msra.mxu0 %v1137_v6 }
  0x6d   : > { %763 = vmatprep.subr.mxu0 %v984_v3 }
  0x6e   : > { %764 = vmatpush3.msra.mxu0 %v1143_v7 }
  0x6f   : > { %765 = vmatprep.subr.mxu0 %v984_v3 }
  0x70   : > { %766 = vmatpush3.msra.mxu0 %v1149_v8 }
  0x71   : > { %767 = vmatprep.subr.mxu0 %v984_v3 }
  0x72   : > { %768 = vmatpush3.msra.mxu0 %v1155_v9 }
  0x73   : > { %769 = vmatprep.subr.mxu0 %v984_v3 }
  0x74   : > { %770 = vmatpush3.msra.mxu0 %v1161_v10 }
  0x75   : > { %771 = vmatprep.subr.mxu0 %v984_v3 }
  0x76   : > { %772 = vmatpush3.msra.mxu0 %v1167_v11 }
  0x77   : > { %773 = vmatprep.subr.mxu0 %v984_v3 }
  0x78   : > { %774 = vmatpush3.msra.mxu0 %v260_v12 }
  0x79   : > { %775 = vmatprep.subr.mxu0 %v984_v3 }
  0x7a   : > { %776 = vmatpush3.msra.mxu0 %v259_v13 }
  0x7b   : > { %777 = vmatprep.subr.mxu0 %v984_v3 }
  0x7c   : > { %778 = vmatpush3.msra.mxu0 %v258_v14 }
  0x7d   : > { %779 = vmatprep.subr.mxu0 %v984_v3 }
  0x7e   : > { %780 = vmatpush3.msra.mxu0 %v257_v15 }
  0x7f   : > { %781 = vmatprep.subr.mxu0 %v984_v3 }
  0x80   : > { %782 = vmatpush3.msra.mxu0 %v256_v16 }
  0x81   : > { %783 = vmatprep.subr.mxu0 %v984_v3 }
  0x82   : > { %784 = vmatpush3.msra.mxu0 %v255_v17 }
  0x83   : > { %785 = vmatprep.subr.mxu0 %v984_v3 }
  0x84   : > { %786 = vmatpush3.msra.mxu0 %v254_v18 }
 0x124   : > { %v339_v21 = vpop.f32.mrf.mxu0 }
 0x125   : > { %v343_v22 = vadd.f32 %v339_v21, %v272_v20 }
 0x126   : > { %v719_v23 = vpop.f32.mrf.mxu0 }
 0x127   : > { %863 = vtanh.f32 %v343_v22 }
 0x134   : > { %v864_v25 = vpop.eup %863 }
 0x135   : > { %v349_v26 = vsel %vm348_vm1, %v864_v25, %v271_v19 }
 0x136   : > { %753 = vmatmul.mubr.f32.vlgmr.msra.gmra.mxu1 %v349_v26 }
 0x1f6   : > { %v418_v28 = vpop.f32.mrf.mxu1 }
 0x1f7   : > { %v422_v29 = vadd.f32 %v625_v27, %v418_v28 }
 0x1f8   : > { %v754_v30 = vpop.f32.mrf.mxu1 }
 0x1f9   : > { %865 = vtanh.f32 %v422_v29 }
 0x206   : > { %v866_v32 = vpop.eup %865 }
 0x207   : > { %v429_v33 = vsel %vm428_vm2, %v866_v32, %v349_v26 }
 0x208   : > { %788 = vmatmul.mubr.f32.vlgmr.msra.gmra.mxu0 %v429_v33 }
 0x2c8   : > { %v498_v35 = vpop.f32.mrf.mxu0 }
 0x2c9   : > { %v502_v36 = vadd.f32 %v626_v34, %v498_v35 }
 0x2ca   : > { %v789_v37 = vpop.f32.mrf.mxu0 }
 0x2cb   : > { %867 = vtanh.f32 %v502_v36 }
 0x2d6   : > { %514 = sbr.rel (%p627_p11) target bundleno = 875 (0x36b), region = 52 }
 0x2d8   : > { %v868_v39 = vpop.eup %867 }
 0x2d9   : > { %v509_v40 = vsel %vm508_vm3, %v868_v39, %v429_v33 }
 0x2da   : > { %510 = vst [vmem:[#allocation2] sm:$0xff] %v509_v40 }
 0x2db   : > { %v628_v41 = vld [vmem:[%s1256_s2] ss:$0 sm:$0xff]  ;;  %v629_v43 = vld [vmem:[#allocation3] ss:$0 sm:$0xff]  ;;  %vm533_vm4 = vcmask 7168  }
 0x2dc   : > { %v522_v42 = vmul.f32 %v628_v41, %v509_v40 }
 0x2de   : > { %523 = vadd.xlane.f32.xlu0 %v522_v42 }
 0x367   : > { %v524_v44 = vpop.xlane.xlu0 %523 }
 0x368   : > { %v532_v45 = vadd.f32 %v629_v43, %v524_v44 }
 0x36a   : > { %534 = vst.msk [vmem:[%s1258_s4] sm:$0xff] %vm533_vm4, %v532_v45 }
 0x36b PF: > { %s20_s22 = sadd.s32 1, %s977_s22   ;;  %s1264_s17 = smov %s961_s18 }
 0x36c   : > { %p17_p12 = scmp.ge.s32.totalorder %s20_s22, 5   ;;  %s1265_s18 = smov %s965_s19 }
 0x36d   : > { %s1266_s19 = smov %s1094_s14  ;;  %s1267_s20 = smov %s973_s21 }
 0x36e   : > { %s1268_s21 = smov %s1270_s29  ;;  %19 = sbr.rel (!%p17_p12) target bundleno = 8 (0x8), region = 90 }
 0x373   :  { %554 = vsyncpa [#allocation5], 1 }
 0x374   :  { %556 = vsyncpa [#allocation5 + $0x1], 1 }
 0x375   :  { %557 = vsyncpa [#allocation7], 1 }

</bundles_post_ra>
